<compile_context>
chip_gen: v7x
topology: tpu7x:2x2x1
jax: 0.10.0
libtpu: 0.0.40
codegen_flags: <defaults>
</compile_context>

<pallas_src>
import functools

import jax
import jax.numpy as jnp
from jax import lax
from jax.experimental import pallas as pl
from jax.experimental.pallas import tpu as pltpu


def _round_up(x, m):
    return (x + m - 1) // m * m


def _patch_remaining_kernel(x_ref, w_ref, b_ref, o_ref):
    # x_ref: (C_in, tn)   -- channels on sublanes, spatial tokens on lanes
    # w_ref: (C_in, C_out), b_ref: (1, C_out), o_ref: (tn, C_out)
    # Contract the channel axis (dim 0 of both operands) on the MXU; f32
    # accumulation via preferred_element_type, operands stay in native dtype.
    y = lax.dot_general(
        x_ref[...],
        w_ref[...],
        dimension_numbers=(((0,), (0,)), ((), ())),
        preferred_element_type=jnp.float32,
    )
    o_ref[...] = (y + b_ref[...].astype(jnp.float32)).astype(o_ref.dtype)


def _choose_token_tile(hw, batch, target):
    """Spatial-token tile (lane axis): must be a multiple of 128 or the full extent."""
    if hw <= 128:
        return hw
    tn = min(hw, target)
    if tn < hw:
        tn = max(128, (tn // 128) * 128)
    # Keep at least 2 grid steps overall so v7x's two TensorCores both get work.
    if batch == 1 and tn == hw:
        half = (hw // 2 // 128) * 128
        if half >= 128:
            tn = half
    return tn


@functools.partial(jax.jit, static_argnames=("token_tile",))
def patch_remaining_pallas(x, weight, bias, *, token_tile=2048):
    """x: [B, C_in, H, W]; weight: [C_out, C_in] (PyTorch layout); bias: [C_out].

    Returns y = x.permute(0, 2, 3, 1) @ weight.T + bias, shape [B, H, W, C_out].
    """
    B, C_in, H, W = x.shape
    C_out = weight.shape[0]
    HW = H * W

    # Free reshape of contiguous NCHW; the permute itself is fused into the kernel.
    x3 = x.reshape(B, C_in, HW)
    w_t = weight.T                       # (C_in, C_out) -- tiny one-off transpose
    b2 = bias.reshape(1, C_out)

    tn = _choose_token_tile(HW, B, token_tile)
    n_tiles = pl.cdiv(HW, tn)

    # VMEM plan: double-buffered x/out tiles + resident weight/bias, with headroom.
    ib = jnp.dtype(x.dtype).itemsize
    wb = jnp.dtype(weight.dtype).itemsize
    cin_v = _round_up(C_in, 8)
    cout_v = _round_up(C_out, 128)
    tn_v = _round_up(tn, 128)
    plan = (2 * cin_v * tn_v * ib                    # x tiles (double-buffered)
            + 2 * _round_up(tn, 8) * cout_v * ib     # out tiles (double-buffered)
            + cin_v * cout_v * wb                    # resident weight (single)
            + 8 * cout_v * wb)                       # bias
    vmem_limit = min(max(2 * plan + (2 << 20), 16 << 20), 48 << 20)

    out = pl.pallas_call(
        _patch_remaining_kernel,
        out_shape=jax.ShapeDtypeStruct((B, HW, C_out), x.dtype),
        grid_spec=pltpu.PrefetchScalarGridSpec(
            num_scalar_prefetch=0,
            grid=(B, n_tiles),
            in_specs=[
                # x slab: one batch, all channels, tn spatial tokens (lane axis).
                pl.BlockSpec((None, C_in, tn), lambda b, j: (b, 0, j)),
                # Grid-invariant weight / bias: fetched once, single-buffered.
                pl.BlockSpec((C_in, C_out), lambda b, j: (0, 0),
                             pipeline_mode=pl.Buffered(1)),
                pl.BlockSpec((1, C_out), lambda b, j: (0, 0),
                             pipeline_mode=pl.Buffered(1)),
            ],
            out_specs=pl.BlockSpec((None, tn, C_out), lambda b, j: (b, j, 0)),
        ),
        compiler_params=pltpu.CompilerParams(
            dimension_semantics=("parallel", "parallel"),
            vmem_limit_bytes=vmem_limit,
        ),
    )(x3, w_t, b2)

    # Free reshape: [B, H*W, C_out] -> [B, H, W, C_out].
    return out.reshape(B, H, W, C_out)


def init_patch_remaining_params(key, in_channels, out_channels, dtype=jnp.float32):
    """Deterministic init mimicking nn.Linear defaults (uniform +/- 1/sqrt(fan_in))."""
    kw, kb = jax.random.split(key)
    lim = 1.0 / (in_channels ** 0.5)
    # PyTorch layout: weight [out, in], bias [out].
    weight = jax.random.uniform(kw, (out_channels, in_channels), dtype, -lim, lim)
    bias = jax.random.uniform(kb, (out_channels,), dtype, -lim, lim)
    return weight, bias


if __name__ == "__main__":
    key = jax.random.PRNGKey(0)
    kx, kp = jax.random.split(key)

    # PatchRemaining(in_channels=4, out_channels=8) on a [2, 4, 16, 16] input.
    batch, in_channels, height, width = 2, 4, 16, 16
    out_channels = 8

    x = jax.random.normal(kx, (batch, in_channels, height, width), dtype=jnp.float32)
    weight, bias = init_patch_remaining_params(kp, in_channels, out_channels)

    y = patch_remaining_pallas(x, weight, bias)
    y = jax.block_until_ready(y)

    # Pure-JAX reference: x.permute(0,2,3,1) @ W.T + b
    y_ref = jnp.transpose(x, (0, 2, 3, 1)) @ weight.T + bias

    assert y.shape == (batch, height, width, out_channels)
    err = float(jnp.max(jnp.abs(y - y_ref)))
    assert jnp.allclose(y, y_ref, atol=1e-5, rtol=1e-5), f"max abs err {err}"

    print("KERNEL_OK")
</pallas_src>

<mosaic_0001>
module attributes {stable_mosaic.version = 11 : i64} {
  func.func @_patch_remaining_kernel(%arg0: i32, %arg1: i32, %arg2: memref<1x4x256xf32, #tpu.memory_space<vmem>>, %arg3: memref<4x8xf32, #tpu.memory_space<vmem>>, %arg4: memref<1x8xf32, #tpu.memory_space<vmem>>, %arg5: memref<1x256x8xf32, #tpu.memory_space<vmem>>) attributes {dimension_semantics = [#tpu.dimension_semantics<parallel>, #tpu.dimension_semantics<parallel>], iteration_bounds = array<i64: 2, 1>, scalar_prefetch = 0 : i64, scratch_operands = 0 : i64, tpu.core_type = #tpu.core_type<tc>, window_params = [{transform_indices = @transform_0, window_bounds = array<i64: 1, 4, 256>}, {pipeline_mode = #tpu.pipeline_mode<synchronous>, transform_indices = @transform_1, window_bounds = array<i64: 4, 8>}, {pipeline_mode = #tpu.pipeline_mode<synchronous>, transform_indices = @transform_2, window_bounds = array<i64: 1, 8>}, {transform_indices = @transform_3, window_bounds = array<i64: 1, 256, 8>}]} {
    %c0 = arith.constant 0 : index
    %c0_0 = arith.constant 0 : index
    %c0_1 = arith.constant 0 : index
    %0 = vector.load %arg2[%c0, %c0_0, %c0_1] : memref<1x4x256xf32, #tpu.memory_space<vmem>>, vector<1x4x256xf32>
    %1 = vector.shape_cast %0 : vector<1x4x256xf32> to vector<4x256xf32>
    %c0_2 = arith.constant 0 : index
    %c0_3 = arith.constant 0 : index
    %2 = vector.load %arg3[%c0_2, %c0_3] : memref<4x8xf32, #tpu.memory_space<vmem>>, vector<4x8xf32>
    %cst = arith.constant dense<0.000000e+00> : vector<256x8xf32>
    %3 = tpu.matmul %1, %2, %cst {dimension_numbers = #tpu.dot_dimension_numbers<[0], [0], [1], [1], [0, 1, 1, 1], [], []>} : vector<4x256xf32>, vector<4x8xf32>, vector<256x8xf32> -> vector<256x8xf32>
    %c0_4 = arith.constant 0 : index
    %c0_5 = arith.constant 0 : index
    %4 = vector.load %arg4[%c0_4, %c0_5] : memref<1x8xf32, #tpu.memory_space<vmem>>, vector<1x8xf32>
    %5 = vector.broadcast %4 : vector<1x8xf32> to vector<256x8xf32>
    %6 = arith.addf %3, %5 : vector<256x8xf32>
    %c0_6 = arith.constant 0 : index
    %c0_7 = arith.constant 0 : index
    %c0_8 = arith.constant 0 : index
    %7 = vector.load %arg5[%c0_6, %c0_7, %c0_8] : memref<1x256x8xf32, #tpu.memory_space<vmem>>, vector<1x256x8xf32>
    %8 = vector.shape_cast %7 : vector<1x256x8xf32> to vector<256x8xf32>
    %9 = vector.shape_cast %6 : vector<256x8xf32> to vector<1x256x8xf32>
    tpu.vector_store %arg5[%c0_6, %c0_7, %c0_8], %9 {strides = array<i32>} : memref<1x256x8xf32, #tpu.memory_space<vmem>>, vector<1x256x8xf32>,
    return
  }
  func.func @transform_0(%arg0: i32, %arg1: i32) -> (i32, i32, i32) {
    %c0_i32 = arith.constant 0 : i32
    %c0_i32_0 = arith.constant 0 : i32
    return %arg0, %c0_i32, %arg1 : i32, i32, i32
  }
  func.func @transform_1(%arg0: i32, %arg1: i32) -> (i32, i32) {
    %c0_i32 = arith.constant 0 : i32
    %c0_i32_0 = arith.constant 0 : i32
    %c0_i32_1 = arith.constant 0 : i32
    return %c0_i32, %c0_i32_0 : i32, i32
  }
  func.func @transform_2(%arg0: i32, %arg1: i32) -> (i32, i32) {
    %c0_i32 = arith.constant 0 : i32
    %c0_i32_0 = arith.constant 0 : i32
    %c0_i32_1 = arith.constant 0 : i32
    return %c0_i32, %c0_i32_0 : i32, i32
  }
  func.func @transform_3(%arg0: i32, %arg1: i32) -> (i32, i32, i32) {
    %c0_i32 = arith.constant 0 : i32
    %c0_i32_0 = arith.constant 0 : i32
    return %arg0, %arg1, %c0_i32 : i32, i32, i32
  }
}

</mosaic_0001>

<bundles_post_ra>
// kernel: patch_remaining_pallas.1
= control target key start
LH: loop header
LB: loop body
LE: loop exit
PB: predicated region body
PF: predicated region fallthrough
CT: control target
= control target key end

     0   :  { %s934_s12 = smov 0   ;;  %s936_s13 = smov 0   ;;  %s1109_s0 = inlined_call_operand.vmem [shape: f32[2,4,256], index: 0, kind: input, shape index: {}]   ;;  %s1110_s1 = inlined_call_operand.vmem [shape: f32[4,8], index: 1, kind: input, shape index: {}]   ;;  %s1111_s2 = inlined_call_operand.vmem [shape: f32[1,8], index: 2, kind: input, shape index: {}]   ;;  %s1112_s3 = inlined_call_operand.vmem [shape: f32[2,256,8], index: 3, kind: output, shape index: {}]  }
   0x1   :  { %s938_s14 = smov 0  }
   0x2 LB: > { %s25_s15 = sadd.s32 1, %s908_s13  ;;  %p736_p0 = scmp.ge.s32.totalorder %s912_s14, 1  ;;  %s912_s14 = sphi %s938_s14, %s13_s14   ;;  %s908_s13 = sphi %s936_s13, %s1114_s13   ;;  %s904_s12 = sphi %s934_s12, %s1113_s12  }
   0x3   : > { %p27_p1 = scmp.ge.s32.totalorder %s25_s15, 2  ;;  %p158_p2 = scmp.lt.s32.totalorder %s912_s14, 3 }
   0x5   : > { %s1116_s15 = smov (%p27_p1, %s25_s15), 0  ;;  %p159_p3 = pnand %p736_p0, %p158_p2 }
   0x6   : > { %p191_p4 = scmp.lt.s32.totalorder (!%p159_p3), %s904_s12, 1  ;;  %v211_v1 = vld [vmem:[%s1110_s1] sm:$0xf] (!%p159_p3)  ;;  %vm383_vm0 = vcmask (!%p159_p3), 1043456   ;;  %vm286_vm1 = vcmask (!%p159_p3), 31744   ;;  %vm612_vm2 = vcmask (!%p159_p3), 64512  }
   0x7   : > { %162 = sbr.rel (%p159_p3) target bundleno = 487 (0x1e7), region = 32  ;;  %812 = vmatprep.subr.msk.mxu0 (!%p159_p3), %vm383_vm0, %v211_v1  ;;  %862 = vmatprep.subr.msk.mxu1 (!%p159_p3), %vm383_vm0, %v211_v1  ;;  %v997_v35 = vld [vmem:[%s1111_s2] ss:$0 sm:$0xff] (!%p159_p3) }
   0x8   : > { %813 = vmatpush3.msk.msra.mxu0 (!%p159_p3), %vm383_vm0, %v211_v1  ;;  %863 = vmatpush3.msk.msra.mxu1 (!%p159_p3), %vm383_vm0, %v211_v1 }
   0xe   : > { %s1118_s12 = smov (!%p191_p4, %s904_s12), 1 }
   0xf   : > { %s777_s16 = sshll.u32 %s1118_s12, 3  ;;  %s778_s22 = sshll.u32 %s1118_s12, 8 }
  0x10   : > { %s198_s19 = scalar_lea.vmem %s1109_s0, %s777_s16  ;;  %s1002_s27 = scalar_lea.vmem %s1112_s3, %s778_s22 }
  0x11   : > { %v210_v0 = vld [vmem:[%s198_s19] sm:$0xff] }
  0x12   : > { %222 = vxpose.xlu0.b32.start.end [1/1] (short) %v210_v0, 128  ;;  %v220_v2 = vcombine.high %v210_v0, %v210_v0 }
  0x4f   : > { %254 = vxpose.xlu0.b32.start.end [1/1] (short) %v220_v2, 128 }
  0x92   : > { %v238_v3 = vpop.trf.xlu0 }
  0x93   : > { %814 = vmatprep.mubr.msk.f32.mxu0 %vm286_vm1, %v238_v3 }
  0x96   : > { %v239_v4 = vpop.trf.xlu0 }
  0x97   : > { %815 = vmatmul.mubr.msk.f32.vlgmr.msra.gmra.mrb[0].mxu0 %vm286_vm1, %v239_v4 }
  0x9a   : > { %v240_v5 = vpop.trf.xlu0 }
  0x9b   : > { %817 = vmatprep.mubr.msk.f32.mxu0 %vm286_vm1, %v240_v5 }
  0x9e   : > { %v241_v6 = vpop.trf.xlu0 }
  0x9f   : > { %818 = vmatmul.mubr.msk.f32.gmra.mrb[2].mxu0 %vm286_vm1, %v241_v6 }
  0xa2   : > { %v242_v7 = vpop.trf.xlu0 }
  0xa3   : > { %820 = vmatprep.mubr.msk.f32.mxu0 %vm286_vm1, %v242_v7 }
  0xa6   : > { %v243_v8 = vpop.trf.xlu0 }
  0xa7   : > { %821 = vmatmul.mubr.msk.f32.gmra.mrb[4].mxu0 %vm286_vm1, %v243_v8 }
  0xaa   : > { %v244_v9 = vpop.trf.xlu0 }
  0xab   : > { %823 = vmatprep.mubr.msk.f32.mxu0 %vm286_vm1, %v244_v9 }
  0xae   : > { %v245_v10 = vpop.trf.xlu0 }
  0xaf   : > { %824 = vmatmul.mubr.msk.f32.gmra.mrb[6].mxu0 %vm286_vm1, %v245_v10 }
  0xb2   : > { %v246_v11 = vpop.trf.xlu0 }
  0xb3   : > { %826 = vmatprep.mubr.msk.f32.mxu0 %vm286_vm1, %v246_v11 }
  0xb6   : > { %v247_v12 = vpop.trf.xlu0 }
  0xb7   : > { %827 = vmatmul.mubr.msk.f32.gmra.mrb[8].mxu0 %vm286_vm1, %v247_v12 }
  0xba   : > { %v248_v13 = vpop.trf.xlu0 }
  0xbb   : > { %829 = vmatprep.mubr.msk.f32.mxu0 %vm286_vm1, %v248_v13 }
  0xbe   : > { %v249_v14 = vpop.trf.xlu0 }
  0xbf   : > { %830 = vmatmul.mubr.msk.f32.gmra.mrb[10].mxu0 %vm286_vm1, %v249_v14 }
  0xc2   : > { %v250_v15 = vpop.trf.xlu0 }
  0xc3   : > { %832 = vmatprep.mubr.msk.f32.mxu0 %vm286_vm1, %v250_v15 }
  0xc6   : > { %v251_v16 = vpop.trf.xlu0 }
  0xc7   : > { %833 = vmatmul.mubr.msk.f32.gmra.mrb[12].mxu0 %vm286_vm1, %v251_v16 }
  0xca   : > { %v252_v17 = vpop.trf.xlu0 }
  0xcb   : > { %835 = vmatprep.mubr.msk.f32.mxu0 %vm286_vm1, %v252_v17 }
  0xce   : > { %v253_v18 = vpop.trf.xlu0 }
  0xcf   : > { %836 = vmatmul.mubr.msk.f32.gmra.mrb[14].mxu0 %vm286_vm1, %v253_v18 }
  0xd2   : > { %v270_v19 = vpop.trf.xlu0 }
  0xd3   : > { %838 = vmatprep.mubr.msk.f32.mxu1 %vm286_vm1, %v270_v19 }
  0xd6   : > { %v271_v20 = vpop.trf.xlu0 }
  0xd7   : > { %839 = vmatmul.mubr.msk.f32.vlgmr.msra.gmra.mrb[0].mxu1 %vm286_vm1, %v271_v20 }
  0xda   : > { %v272_v21 = vpop.trf.xlu0 }
  0xdb   : > { %841 = vmatprep.mubr.msk.f32.mxu1 %vm286_vm1, %v272_v21 }
  0xde   : > { %v273_v22 = vpop.trf.xlu0 }
  0xdf   : > { %842 = vmatmul.mubr.msk.f32.gmra.mrb[2].mxu1 %vm286_vm1, %v273_v22 }
  0xe2   : > { %v274_v23 = vpop.trf.xlu0 }
  0xe3   : > { %844 = vmatprep.mubr.msk.f32.mxu1 %vm286_vm1, %v274_v23 }
  0xe6   : > { %v275_v24 = vpop.trf.xlu0 }
  0xe7   : > { %845 = vmatmul.mubr.msk.f32.gmra.mrb[4].mxu1 %vm286_vm1, %v275_v24 }
  0xea   : > { %v276_v25 = vpop.trf.xlu0 }
  0xeb   : > { %847 = vmatprep.mubr.msk.f32.mxu1 %vm286_vm1, %v276_v25 }
  0xee   : > { %v277_v26 = vpop.trf.xlu0 }
  0xef   : > { %848 = vmatmul.mubr.msk.f32.gmra.mrb[6].mxu1 %vm286_vm1, %v277_v26 }
  0xf2   : > { %v278_v27 = vpop.trf.xlu0 }
  0xf3   : > { %850 = vmatprep.mubr.msk.f32.mxu1 %vm286_vm1, %v278_v27 }
  0xf6   : > { %v279_v28 = vpop.trf.xlu0 }
  0xf7   : > { %851 = vmatmul.mubr.msk.f32.gmra.mrb[8].mxu1 %vm286_vm1, %v279_v28 }
  0xfa   : > { %v280_v29 = vpop.trf.xlu0 }
  0xfb   : > { %853 = vmatprep.mubr.msk.f32.mxu1 %vm286_vm1, %v280_v29 }
  0xfe   : > { %v281_v30 = vpop.trf.xlu0 }
  0xff   : > { %854 = vmatmul.mubr.msk.f32.gmra.mrb[10].mxu1 %vm286_vm1, %v281_v30 }
 0x102   : > { %v282_v31 = vpop.trf.xlu0 }
 0x103   : > { %856 = vmatprep.mubr.msk.f32.mxu1 %vm286_vm1, %v282_v31 }
 0x106   : > { %v283_v32 = vpop.trf.xlu0 }
 0x107   : > { %857 = vmatmul.mubr.msk.f32.gmra.mrb[12].mxu1 %vm286_vm1, %v283_v32 }
 0x10a   : > { %v284_v33 = vpop.trf.xlu0 }
 0x10b   : > { %859 = vmatprep.mubr.msk.f32.mxu1 %vm286_vm1, %v284_v33 }
 0x10e   : > { %v285_v34 = vpop.trf.xlu0 }
 0x10f   : > { %860 = vmatmul.mubr.msk.f32.gmra.mrb[14].mxu1 %vm286_vm1, %v285_v34 }
 0x16a   : > { %v816_v36 = vpop.f32.mrb[0].mxu0 }
 0x16b   : > { %v459_v37 = vadd.f32 %v816_v36, %v997_v35  ;;  %v453_v38 = vpop.f32.mrb[1].mxu0 }
 0x16c   : > { %v454_v39 = vadd.f32 %v997_v35, %v453_v38 }
 0x16d   : > { %614 = vst.msk [vmem:[%s1002_s27 + $0x8] sm:$0xff] %vm612_vm2, %v459_v37 }
 0x16e   : > { %613 = vst.msk [vmem:[%s1002_s27] sm:$0xff] %vm612_vm2, %v454_v39 }
 0x172   : > { %v819_v40 = vpop.f32.mrb[2].mxu0 }
 0x173   : > { %v469_v41 = vadd.f32 %v819_v40, %v997_v35  ;;  %v463_v42 = vpop.f32.mrb[3].mxu0 }
 0x174   : > { %v464_v43 = vadd.f32 %v997_v35, %v463_v42 }
 0x175   : > { %616 = vst.msk [vmem:[%s1002_s27 + $0x18] sm:$0xff] %vm612_vm2, %v469_v41 }
 0x176   : > { %615 = vst.msk [vmem:[%s1002_s27 + $0x10] sm:$0xff] %vm612_vm2, %v464_v43 }
 0x17a   : > { %v822_v44 = vpop.f32.mrb[4].mxu0 }
 0x17b   : > { %v479_v45 = vadd.f32 %v822_v44, %v997_v35  ;;  %v473_v46 = vpop.f32.mrb[5].mxu0 }
 0x17c   : > { %v474_v47 = vadd.f32 %v997_v35, %v473_v46 }
 0x17d   : > { %618 = vst.msk [vmem:[%s1002_s27 + $0x28] sm:$0xff] %vm612_vm2, %v479_v45 }
 0x17e   : > { %617 = vst.msk [vmem:[%s1002_s27 + $0x20] sm:$0xff] %vm612_vm2, %v474_v47 }
 0x182   : > { %v825_v48 = vpop.f32.mrb[6].mxu0 }
 0x183   : > { %v489_v49 = vadd.f32 %v825_v48, %v997_v35  ;;  %v483_v50 = vpop.f32.mrb[7].mxu0 }
 0x184   : > { %v484_v51 = vadd.f32 %v997_v35, %v483_v50 }
 0x185   : > { %620 = vst.msk [vmem:[%s1002_s27 + $0x38] sm:$0xff] %vm612_vm2, %v489_v49 }
 0x186   : > { %619 = vst.msk [vmem:[%s1002_s27 + $0x30] sm:$0xff] %vm612_vm2, %v484_v51 }
 0x18a   : > { %v828_v52 = vpop.f32.mrb[8].mxu0 }
 0x18b   : > { %v499_v53 = vadd.f32 %v828_v52, %v997_v35  ;;  %v493_v54 = vpop.f32.mrb[9].mxu0 }
 0x18c   : > { %v494_v55 = vadd.f32 %v997_v35, %v493_v54 }
 0x18d   : > { %622 = vst.msk [vmem:[%s1002_s27 + $0x48] sm:$0xff] %vm612_vm2, %v499_v53 }
 0x18e   : > { %621 = vst.msk [vmem:[%s1002_s27 + $0x40] sm:$0xff] %vm612_vm2, %v494_v55 }
 0x192   : > { %v831_v56 = vpop.f32.mrb[10].mxu0 }
 0x193   : > { %v509_v57 = vadd.f32 %v831_v56, %v997_v35  ;;  %v503_v58 = vpop.f32.mrb[11].mxu0 }
 0x194   : > { %v504_v59 = vadd.f32 %v997_v35, %v503_v58 }
 0x195   : > { %624 = vst.msk [vmem:[%s1002_s27 + $0x58] sm:$0xff] %vm612_vm2, %v509_v57 }
 0x196   : > { %623 = vst.msk [vmem:[%s1002_s27 + $0x50] sm:$0xff] %vm612_vm2, %v504_v59 }
 0x19a   : > { %v834_v60 = vpop.f32.mrb[12].mxu0 }
 0x19b   : > { %v519_v61 = vadd.f32 %v834_v60, %v997_v35  ;;  %v513_v62 = vpop.f32.mrb[13].mxu0 }
 0x19c   : > { %v514_v63 = vadd.f32 %v997_v35, %v513_v62 }
 0x19d   : > { %626 = vst.msk [vmem:[%s1002_s27 + $0x68] sm:$0xff] %vm612_vm2, %v519_v61 }
 0x19e   : > { %625 = vst.msk [vmem:[%s1002_s27 + $0x60] sm:$0xff] %vm612_vm2, %v514_v63 }
 0x1a2   : > { %v837_v0 = vpop.f32.mrb[14].mxu0 }
 0x1a3   : > { %v529_v1 = vadd.f32 %v837_v0, %v997_v35  ;;  %v523_v2 = vpop.f32.mrb[15].mxu0 }
 0x1a4   : > { %v524_v3 = vadd.f32 %v997_v35, %v523_v2 }
 0x1a5   : > { %628 = vst.msk [vmem:[%s1002_s27 + $0x78] sm:$0xff] %vm612_vm2, %v529_v1 }
 0x1a6   : > { %627 = vst.msk [vmem:[%s1002_s27 + $0x70] sm:$0xff] %vm612_vm2, %v524_v3 }
 0x1aa   : > { %v840_v4 = vpop.f32.mrb[0].mxu1 }
 0x1ab   : > { %v539_v5 = vadd.f32 %v840_v4, %v997_v35  ;;  %v533_v6 = vpop.f32.mrb[1].mxu1 }
 0x1ac   : > { %v534_v7 = vadd.f32 %v997_v35, %v533_v6 }
 0x1ad   : > { %630 = vst.msk [vmem:[%s1002_s27 + $0x88] sm:$0xff] %vm612_vm2, %v539_v5 }
 0x1ae   : > { %629 = vst.msk [vmem:[%s1002_s27 + $0x80] sm:$0xff] %vm612_vm2, %v534_v7 }
 0x1b2   : > { %v843_v8 = vpop.f32.mrb[2].mxu1 }
 0x1b3   : > { %v549_v9 = vadd.f32 %v843_v8, %v997_v35  ;;  %v543_v10 = vpop.f32.mrb[3].mxu1 }
 0x1b4   : > { %v544_v11 = vadd.f32 %v997_v35, %v543_v10 }
 0x1b5   : > { %632 = vst.msk [vmem:[%s1002_s27 + $0x98] sm:$0xff] %vm612_vm2, %v549_v9 }
 0x1b6   : > { %631 = vst.msk [vmem:[%s1002_s27 + $0x90] sm:$0xff] %vm612_vm2, %v544_v11 }
 0x1ba   : > { %v846_v12 = vpop.f32.mrb[4].mxu1 }
 0x1bb   : > { %v559_v13 = vadd.f32 %v846_v12, %v997_v35  ;;  %v553_v14 = vpop.f32.mrb[5].mxu1 }
 0x1bc   : > { %v554_v15 = vadd.f32 %v997_v35, %v553_v14 }
 0x1bd   : > { %634 = vst.msk [vmem:[%s1002_s27 + $0xa8] sm:$0xff] %vm612_vm2, %v559_v13 }
 0x1be   : > { %633 = vst.msk [vmem:[%s1002_s27 + $0xa0] sm:$0xff] %vm612_vm2, %v554_v15 }
 0x1c2   : > { %v849_v16 = vpop.f32.mrb[6].mxu1 }
 0x1c3   : > { %v569_v17 = vadd.f32 %v849_v16, %v997_v35  ;;  %v563_v18 = vpop.f32.mrb[7].mxu1 }
 0x1c4   : > { %v564_v19 = vadd.f32 %v997_v35, %v563_v18 }
 0x1c5   : > { %636 = vst.msk [vmem:[%s1002_s27 + $0xb8] sm:$0xff] %vm612_vm2, %v569_v17 }
 0x1c6   : > { %635 = vst.msk [vmem:[%s1002_s27 + $0xb0] sm:$0xff] %vm612_vm2, %v564_v19 }
 0x1ca   : > { %v852_v20 = vpop.f32.mrb[8].mxu1 }
 0x1cb   : > { %v579_v21 = vadd.f32 %v852_v20, %v997_v35  ;;  %v573_v22 = vpop.f32.mrb[9].mxu1 }
 0x1cc   : > { %v574_v23 = vadd.f32 %v997_v35, %v573_v22 }
 0x1cd   : > { %638 = vst.msk [vmem:[%s1002_s27 + $0xc8] sm:$0xff] %vm612_vm2, %v579_v21 }
 0x1ce   : > { %637 = vst.msk [vmem:[%s1002_s27 + $0xc0] sm:$0xff] %vm612_vm2, %v574_v23 }
 0x1d2   : > { %v855_v24 = vpop.f32.mrb[10].mxu1 }
 0x1d3   : > { %v589_v25 = vadd.f32 %v855_v24, %v997_v35  ;;  %v583_v26 = vpop.f32.mrb[11].mxu1 }
 0x1d4   : > { %v584_v27 = vadd.f32 %v997_v35, %v583_v26 }
 0x1d5   : > { %640 = vst.msk [vmem:[%s1002_s27 + $0xd8] sm:$0xff] %vm612_vm2, %v589_v25 }
 0x1d6   : > { %639 = vst.msk [vmem:[%s1002_s27 + $0xd0] sm:$0xff] %vm612_vm2, %v584_v27 }
 0x1da   : > { %v858_v28 = vpop.f32.mrb[12].mxu1 }
 0x1db   : > { %v599_v29 = vadd.f32 %v858_v28, %v997_v35  ;;  %v593_v30 = vpop.f32.mrb[13].mxu1 }
 0x1dc   : > { %v594_v31 = vadd.f32 %v997_v35, %v593_v30 }
 0x1dd   : > { %642 = vst.msk [vmem:[%s1002_s27 + $0xe8] sm:$0xff] %vm612_vm2, %v599_v29 }
 0x1de   : > { %641 = vst.msk [vmem:[%s1002_s27 + $0xe0] sm:$0xff] %vm612_vm2, %v594_v31 }
 0x1e2   : > { %v861_v32 = vpop.f32.mrb[14].mxu1 }
 0x1e3   : > { %v609_v33 = vadd.f32 %v861_v32, %v997_v35  ;;  %v603_v34 = vpop.f32.mrb[15].mxu1 }
 0x1e4   : > { %v604_v36 = vadd.f32 %v997_v35, %v603_v34 }
 0x1e5   : > { %644 = vst.msk [vmem:[%s1002_s27 + $0xf8] sm:$0xff] %vm612_vm2, %v609_v33 }
 0x1e6   : > { %643 = vst.msk [vmem:[%s1002_s27 + $0xf0] sm:$0xff] %vm612_vm2, %v604_v36 }
 0x1e7 PF: > { %s13_s14 = sadd.s32 1, %s912_s14   ;;  %s1113_s12 = smov %s908_s13 }
 0x1e8   : > { %p10_p5 = scmp.ge.s32.totalorder %s13_s14, 4   ;;  %s1114_s13 = smov %s1116_s15 }
 0x1ea   :  { %12 = sbr.rel (!%p10_p5) target bundleno = 2 (0x2), region = 62 }

</bundles_post_ra>
